<compile_context>
chip_gen: v7x
topology: tpu7x:2x2x1
jax: 0.10.0
libtpu: 0.0.40
codegen_flags: <defaults>
</compile_context>

<pallas_src>
import functools

import jax
import jax.numpy as jnp
from jax import lax
from jax.experimental import pallas as pl
from jax.experimental.pallas import tpu as pltpu


# ---------------------------------------------------------------------------
# Hardware-aware budgets.
# ---------------------------------------------------------------------------

def _tpu_vmem_capacity_bytes():
    """Physical VMEM per TensorCore, with a conservative (v7x) fallback."""
    try:
        cap = int(pltpu.get_tpu_info().vmem_capacity_bytes)
        if cap > 0:
            return cap
    except Exception:
        pass
    return 64 * 1024 * 1024


def _num_tensorcores_per_chip():
    """Best-effort TensorCores per chip: v7x has 2, v5e/v6e have 1."""
    try:
        kind = jax.devices()[0].device_kind.lower()
    except Exception:
        return 1
    return 2 if "7" in kind else 1


def _choose_batch_tile(B, per_batch_io_bytes, io_budget_bytes, num_cores):
    """Largest batch tile whose double-buffered in+out blocks fit the budget."""
    bt = max(1, min(B, io_budget_bytes // max(1, 4 * per_batch_io_bytes)))
    if num_cores >= 2 and B >= 2:
        # Keep >= 2 parallel blocks so the second TensorCore has work, and
        # nudge toward an even block count when it costs at most one row.
        bt = min(bt, pl.cdiv(B, 2))
        if pl.cdiv(B, bt) % 2 and bt > 1 and pl.cdiv(B, bt - 1) % 2 == 0:
            bt -= 1
    return bt


# ---------------------------------------------------------------------------
# Kernels.
# ---------------------------------------------------------------------------

def _excitation(pooled_f32, w1, b1, w2, b2):
    """fc1 -> ReLU -> fc2 -> sigmoid on the MXU.

    (out, in) weight layout is contracted directly (shared axis = axis 1 of
    both operands), so no in-kernel transpose is needed.
    """
    dn = (((1,), (1,)), ((), ()))
    y1 = lax.dot_general(pooled_f32, w1.astype(jnp.float32), dn,
                         preferred_element_type=jnp.float32)
    y1 = jnp.maximum(y1 + b1.astype(jnp.float32), 0.0)
    y2 = lax.dot_general(y1, w2.astype(jnp.float32), dn,
                         preferred_element_type=jnp.float32)
    return jax.nn.sigmoid(y2 + b2.astype(jnp.float32))


def _se_fused_kernel(x_ref, w1_ref, b1_ref, w2_ref, b2_ref, o_ref):
    # x_ref/o_ref: (bt, C, HW)  w1: (Cr, C)  b1: (1, Cr)  w2: (C, Cr)  b2: (1, C)
    x = x_ref[...]
    # Squeeze: f32-accumulated mean over the lane-dense spatial axis.
    pooled = jnp.mean(x, axis=-1, dtype=jnp.float32)                  # (bt, C)
    scale = _excitation(pooled, w1_ref[...], b1_ref[...],
                        w2_ref[...], b2_ref[...])                     # (bt, C)
    o_ref[...] = (x * scale[:, :, None].astype(x.dtype)).astype(o_ref.dtype)


def _se_scale_kernel(x_ref, w1_ref, b1_ref, w2_ref, b2_ref, scale_ref, sum_sc,
                     *, hw_total, hw_tile):
    # Pass 1 of the spatially-tiled fallback: pool-accumulate + excitation.
    # x_ref: (1, C, hw_tile); scale_ref: (1, 1, C) f32; sum_sc: (1, C) f32.
    h = pl.program_id(1)

    @pl.when(h == 0)
    def _():
        sum_sc[...] = jnp.zeros_like(sum_sc)

    x = x_ref[...]
    # Mask lanes past the true spatial extent (remainder-chunk padding).
    lane = lax.broadcasted_iota(jnp.int32, x.shape, dimension=2)
    xm = jnp.where(h * hw_tile + lane < hw_total, x, jnp.zeros_like(x))
    sum_sc[...] += jnp.sum(xm, axis=-1, dtype=jnp.float32)            # (1, C)

    @pl.when(h == pl.num_programs(1) - 1)
    def _():
        pooled = sum_sc[...] * jnp.float32(1.0 / hw_total)
        s = _excitation(pooled, w1_ref[...], b1_ref[...],
                        w2_ref[...], b2_ref[...])                     # (1, C)
        scale_ref[...] = s[:, None, :]


def _se_rescale_kernel(x_ref, scale_ref, o_ref):
    # Pass 2 of the fallback: channel-wise rescale of a lane-dense chunk.
    s = scale_ref[...][:, 0, :]                                       # (1, C)
    o_ref[...] = (x_ref[...] * s[:, :, None].astype(x_ref.dtype)).astype(o_ref.dtype)


# ---------------------------------------------------------------------------
# Wrapper.
# ---------------------------------------------------------------------------

def se_block(x, w1, b1, w2, b2):
    """SEBlock forward.  x: (B, C, H, W); w1: (Cr, C); b1: (Cr,);
    w2: (C, Cr); b2: (C,).  (1x1 Conv2d weights == dense (out, in) matrices.)
    """
    B, C, H, W = x.shape
    Cr = w1.shape[0]
    assert w1.shape == (Cr, C) and w2.shape == (C, Cr)
    assert b1.shape == (Cr,) and b2.shape == (C,)
    HW = H * W
    itemsize = x.dtype.itemsize

    x2 = x.reshape(B, C, HW)            # lane-dense spatial axis
    b1r = b1.reshape(1, Cr)
    b2r = b2.reshape(1, C)

    vmem_cap = _tpu_vmem_capacity_bytes()
    io_budget = vmem_cap // 4           # 2x in + 2x out pipelined buffers
    vmem_limit = (vmem_cap * 3) // 4    # headroom for in-kernel intermediates
    num_cores = _num_tensorcores_per_chip()
    weight_bytes = (w1.size + b1.size + w2.size + b2.size) * w1.dtype.itemsize
    per_batch_io = C * HW * itemsize

    compiler_kwargs = dict(vmem_limit_bytes=int(vmem_limit))

    # Weight/bias specs: constant index maps keep them VMEM-resident.
    def _weight_specs(nargs):
        return [
            pl.BlockSpec((Cr, C), (lambda *a: (0, 0))),
            pl.BlockSpec((1, Cr), (lambda *a: (0, 0))),
            pl.BlockSpec((C, Cr), (lambda *a: (0, 0))),
            pl.BlockSpec((1, C), (lambda *a: (0, 0))),
        ]

    if 4 * per_batch_io <= io_budget:
        # ---- Single-pass fused path: whole (bt, C, HW) slab per grid step.
        bt = _choose_batch_tile(B, per_batch_io, io_budget, num_cores)
        grid_b = pl.cdiv(B, bt)

        out2 = pl.pallas_call(
            _se_fused_kernel,
            out_shape=jax.ShapeDtypeStruct((B, C, HW), x.dtype),
            grid_spec=pltpu.PrefetchScalarGridSpec(
                num_scalar_prefetch=0,
                grid=(grid_b,),
                in_specs=[pl.BlockSpec((bt, C, HW), lambda b: (b, 0, 0))]
                + _weight_specs(1),
                out_specs=pl.BlockSpec((bt, C, HW), lambda b: (b, 0, 0)),
            ),
            compiler_params=pltpu.CompilerParams(
                dimension_semantics=("parallel",), **compiler_kwargs),
            cost_estimate=pl.CostEstimate(
                flops=2 * B * C * HW + 4 * B * C * Cr,
                transcendentals=B * C,
                bytes_accessed=2 * B * C * HW * itemsize + weight_bytes),
        )(x2, w1, b1r, w2, b2r)
        return out2.reshape(B, C, H, W)

    # ---- Spatially-tiled two-pass fallback (slab too big for one block). ----
    # TODO(synk): also tile the channel axis if 4 * C * 128 * itemsize alone
    # exceeds the I/O budget (extremely wide feature maps).
    hw_tile = (io_budget // max(1, 4 * C * itemsize)) // 128 * 128
    hw_tile = max(128, hw_tile)
    if hw_tile >= HW:
        hw_tile = HW
    n_hw = pl.cdiv(HW, hw_tile)

    scale_kernel = functools.partial(_se_scale_kernel, hw_total=HW, hw_tile=hw_tile)
    scale = pl.pallas_call(
        scale_kernel,
        out_shape=jax.ShapeDtypeStruct((B, 1, C), jnp.float32),
        grid_spec=pltpu.PrefetchScalarGridSpec(
            num_scalar_prefetch=0,
            grid=(B, n_hw),
            in_specs=[pl.BlockSpec((1, C, hw_tile), lambda b, h: (b, 0, h))]
            + _weight_specs(2),
            out_specs=pl.BlockSpec((1, 1, C), lambda b, h: (b, 0, 0)),
            scratch_shapes=[pltpu.VMEM((1, C), jnp.float32)],
        ),
        compiler_params=pltpu.CompilerParams(
            dimension_semantics=("parallel", "arbitrary"), **compiler_kwargs),
        cost_estimate=pl.CostEstimate(
            flops=B * C * HW + 4 * B * C * Cr,
            transcendentals=B * C,
            bytes_accessed=B * C * HW * itemsize + weight_bytes + B * C * 4),
    )(x2, w1, b1r, w2, b2r)

    out2 = pl.pallas_call(
        _se_rescale_kernel,
        out_shape=jax.ShapeDtypeStruct((B, C, HW), x.dtype),
        grid_spec=pltpu.PrefetchScalarGridSpec(
            num_scalar_prefetch=0,
            grid=(B, n_hw),
            in_specs=[
                pl.BlockSpec((1, C, hw_tile), lambda b, h: (b, 0, h)),
                pl.BlockSpec((1, 1, C), lambda b, h: (b, 0, 0)),
            ],
            out_specs=pl.BlockSpec((1, C, hw_tile), lambda b, h: (b, 0, h)),
        ),
        compiler_params=pltpu.CompilerParams(
            dimension_semantics=("parallel", "parallel"), **compiler_kwargs),
        cost_estimate=pl.CostEstimate(
            flops=B * C * HW,
            transcendentals=0,
            bytes_accessed=2 * B * C * HW * itemsize + B * C * 4),
    )(x2, scale)
    return out2.reshape(B, C, H, W)


def se_block_reference(x, w1, b1, w2, b2):
    """Pure-JAX reference matching the PyTorch forward."""
    pooled = jnp.mean(x, axis=(2, 3))                       # (B, C)
    y1 = jnp.maximum(pooled @ w1.T + b1, 0.0)               # (B, Cr)
    y2 = jax.nn.sigmoid(y1 @ w2.T + b2)                     # (B, C)
    return x * y2[:, :, None, None]


if __name__ == "__main__":
    # Module config: in_chans=32, reduction=16 -> hidden channels = 2.
    B, C, H, W = 2, 32, 16, 16
    reduction = 16
    Cr = C // reduction

    key = jax.random.PRNGKey(0)
    kx, k1, k2, k3, k4 = jax.random.split(key, 5)

    x = jax.random.normal(kx, (B, C, H, W), dtype=jnp.float32)
    # 1x1 Conv2d weights are equivalent to dense (out, in) matrices.
    w1 = jax.random.normal(k1, (Cr, C), dtype=jnp.float32) * 0.1   # fc1.weight
    b1 = jax.random.normal(k2, (Cr,), dtype=jnp.float32) * 0.1     # fc1.bias
    w2 = jax.random.normal(k3, (C, Cr), dtype=jnp.float32) * 0.1   # fc2.weight
    b2 = jax.random.normal(k4, (C,), dtype=jnp.float32) * 0.1      # fc2.bias

    out = jax.block_until_ready(se_block(x, w1, b1, w2, b2))
    ref = se_block_reference(x, w1, b1, w2, b2)

    assert out.shape == (B, C, H, W)
    # MXU f32 dots may use reduced-precision passes -> slightly looser tol.
    assert jnp.allclose(out, ref, atol=1e-3, rtol=1e-3), \
        float(jnp.max(jnp.abs(out - ref)))

    print("KERNEL_OK")
</pallas_src>

<mosaic_0001>
module attributes {stable_mosaic.version = 11 : i64} {
  func.func @_se_fused_kernel(%arg0: i32, %arg1: memref<2x32x256xf32, #tpu.memory_space<vmem>>, %arg2: memref<2x32xf32, #tpu.memory_space<vmem>>, %arg3: memref<1x2xf32, #tpu.memory_space<vmem>>, %arg4: memref<32x2xf32, #tpu.memory_space<vmem>>, %arg5: memref<1x32xf32, #tpu.memory_space<vmem>>, %arg6: memref<2x32x256xf32, #tpu.memory_space<vmem>>) attributes {dimension_semantics = [#tpu.dimension_semantics<parallel>], iteration_bounds = array<i64: 1>, scalar_prefetch = 0 : i64, scratch_operands = 0 : i64, tpu.core_type = #tpu.core_type<tc>, window_params = [{transform_indices = @transform_0, window_bounds = array<i64: 2, 32, 256>}, {pipeline_mode = #tpu.pipeline_mode<synchronous>, transform_indices = @transform_1, window_bounds = array<i64: 2, 32>}, {pipeline_mode = #tpu.pipeline_mode<synchronous>, transform_indices = @transform_2, window_bounds = array<i64: 1, 2>}, {pipeline_mode = #tpu.pipeline_mode<synchronous>, transform_indices = @transform_3, window_bounds = array<i64: 32, 2>}, {pipeline_mode = #tpu.pipeline_mode<synchronous>, transform_indices = @transform_4, window_bounds = array<i64: 1, 32>}, {transform_indices = @transform_5, window_bounds = array<i64: 2, 32, 256>}]} {
    %c0 = arith.constant 0 : index
    %c0_0 = arith.constant 0 : index
    %c0_1 = arith.constant 0 : index
    %0 = vector.load %arg1[%c0, %c0_0, %c0_1] : memref<2x32x256xf32, #tpu.memory_space<vmem>>, vector<2x32x256xf32>
    %cst = arith.constant dense<0.000000e+00> : vector<2x32xf32>
    %1 = vector.multi_reduction <add>, %0, %cst [2] : vector<2x32x256xf32> to vector<2x32xf32>
    %cst_2 = arith.constant 2.560000e+02 : f32
    %2 = vector.broadcast %cst_2 : f32 to vector<2x32xf32>
    %3 = arith.divf %1, %2 : vector<2x32xf32>
    %c0_3 = arith.constant 0 : index
    %c0_4 = arith.constant 0 : index
    %4 = vector.load %arg2[%c0_3, %c0_4] : memref<2x32xf32, #tpu.memory_space<vmem>>, vector<2x32xf32>
    %c0_5 = arith.constant 0 : index
    %c0_6 = arith.constant 0 : index
    %5 = vector.load %arg3[%c0_5, %c0_6] : memref<1x2xf32, #tpu.memory_space<vmem>>, vector<1x2xf32>
    %c0_7 = arith.constant 0 : index
    %c0_8 = arith.constant 0 : index
    %6 = vector.load %arg4[%c0_7, %c0_8] : memref<32x2xf32, #tpu.memory_space<vmem>>, vector<32x2xf32>
    %c0_9 = arith.constant 0 : index
    %c0_10 = arith.constant 0 : index
    %7 = vector.load %arg5[%c0_9, %c0_10] : memref<1x32xf32, #tpu.memory_space<vmem>>, vector<1x32xf32>
    %cst_11 = arith.constant dense<0.000000e+00> : vector<2x2xf32>
    %8 = tpu.matmul %3, %4, %cst_11 {dimension_numbers = #tpu.dot_dimension_numbers<[1], [1], [0], [0], [0, 0, 1, 0], [], []>} : vector<2x32xf32>, vector<2x32xf32>, vector<2x2xf32> -> vector<2x2xf32>
    %9 = vector.broadcast %5 : vector<1x2xf32> to vector<2x2xf32>
    %10 = arith.addf %8, %9 : vector<2x2xf32>
    %cst_12 = arith.constant 0.000000e+00 : f32
    %11 = vector.broadcast %cst_12 : f32 to vector<2x2xf32>
    %12 = arith.maximumf %10, %11 : vector<2x2xf32>
    %cst_13 = arith.constant dense<0.000000e+00> : vector<2x32xf32>
    %13 = tpu.matmul %12, %6, %cst_13 {dimension_numbers = #tpu.dot_dimension_numbers<[1], [1], [0], [0], [0, 0, 1, 0], [], []>} : vector<2x2xf32>, vector<32x2xf32>, vector<2x32xf32> -> vector<2x32xf32>
    %14 = vector.broadcast %7 : vector<1x32xf32> to vector<2x32xf32>
    %15 = arith.addf %13, %14 : vector<2x32xf32>
    %16 = arith.negf %15 : vector<2x32xf32>
    %17 = math.exp %16 : vector<2x32xf32>
    %cst_14 = arith.constant 1.000000e+00 : f32
    %18 = vector.broadcast %cst_14 : f32 to vector<2x32xf32>
    %19 = arith.addf %18, %17 : vector<2x32xf32>
    %20 = arith.divf %18, %19 : vector<2x32xf32>
    %21 = vector.shape_cast %20 : vector<2x32xf32> to vector<2x32x1xf32>
    %22 = vector.broadcast %21 : vector<2x32x1xf32> to vector<2x32x256xf32>
    %23 = arith.mulf %0, %22 : vector<2x32x256xf32>
    %c0_15 = arith.constant 0 : index
    %c0_16 = arith.constant 0 : index
    %c0_17 = arith.constant 0 : index
    %24 = vector.load %arg6[%c0_15, %c0_16, %c0_17] : memref<2x32x256xf32, #tpu.memory_space<vmem>>, vector<2x32x256xf32>
    tpu.vector_store %arg6[%c0_15, %c0_16, %c0_17], %23 {strides = array<i32>} : memref<2x32x256xf32, #tpu.memory_space<vmem>>, vector<2x32x256xf32>,
    return
  }
  func.func @transform_0(%arg0: i32) -> (i32, i32, i32) {
    %c0_i32 = arith.constant 0 : i32
    %c0_i32_0 = arith.constant 0 : i32
    %c0_i32_1 = arith.constant 0 : i32
    return %arg0, %c0_i32, %c0_i32_0 : i32, i32, i32
  }
  func.func @transform_1(%arg0: i32) -> (i32, i32) {
    %c0_i32 = arith.constant 0 : i32
    %c0_i32_0 = arith.constant 0 : i32
    %c0_i32_1 = arith.constant 0 : i32
    return %c0_i32, %c0_i32_0 : i32, i32
  }
  func.func @transform_2(%arg0: i32) -> (i32, i32) {
    %c0_i32 = arith.constant 0 : i32
    %c0_i32_0 = arith.constant 0 : i32
    %c0_i32_1 = arith.constant 0 : i32
    return %c0_i32, %c0_i32_0 : i32, i32
  }
  func.func @transform_3(%arg0: i32) -> (i32, i32) {
    %c0_i32 = arith.constant 0 : i32
    %c0_i32_0 = arith.constant 0 : i32
    %c0_i32_1 = arith.constant 0 : i32
    return %c0_i32, %c0_i32_0 : i32, i32
  }
  func.func @transform_4(%arg0: i32) -> (i32, i32) {
    %c0_i32 = arith.constant 0 : i32
    %c0_i32_0 = arith.constant 0 : i32
    %c0_i32_1 = arith.constant 0 : i32
    return %c0_i32, %c0_i32_0 : i32, i32
  }
  func.func @transform_5(%arg0: i32) -> (i32, i32, i32) {
    %c0_i32 = arith.constant 0 : i32
    %c0_i32_0 = arith.constant 0 : i32
    %c0_i32_1 = arith.constant 0 : i32
    return %arg0, %c0_i32, %c0_i32_0 : i32, i32, i32
  }
}

</mosaic_0001>

<bundles_post_ra>
// kernel: tpu_custom_call.1
= control target key start
LH: loop header
LB: loop body
LE: loop exit
PB: predicated region body
PF: predicated region fallthrough
CT: control target
= control target key end

     0   :  { %10 = vsyncpa [#allocation3], 0  ;;  %s672_s0 = inlined_call_operand.hbm [shape: f32[2,32,256], index: 0, kind: input, shape index: {}]   ;;  %s673_s1 = inlined_call_operand.vmem [shape: f32[2,32], index: 1, kind: input, shape index: {}]   ;;  %s674_s2 = inlined_call_operand.vmem [shape: f32[1,2], index: 2, kind: input, shape index: {}]   ;;  %s675_s3 = inlined_call_operand.vmem [shape: f32[32,2], index: 3, kind: input, shape index: {}]   ;;  %s676_s4 = inlined_call_operand.vmem [shape: f32[1,32], index: 4, kind: input, shape index: {}]   ;;  %s677_s5 = inlined_call_operand.hbm [shape: f32[2,32,256], index: 5, kind: output, shape index: {}]  }
   0x1   :  { %11 = vsyncpa [#allocation4], 0  ;;  %s515_s18 = smov [#allocation2]   ;;  %s467_s22 = scalar_lea.hbm %s672_s0, 2048 }
   0x2   :  { %s17_s19 = sshll.u32 %s515_s18, 4  ;;  %p468_p0 = scmp.ne.s32.totalorder %s672_s0, %s467_s22  ;;  %s18_s19 = int_to_ptr.vmem [resolvable:$true] %s17_s19 }
   0x3   :  { %p471_p1 = scmp.lt.u32.totalorder %s467_s22, %s672_s0 }
   0x5   :  { %p473_p2 = pnand %p471_p1, %p468_p0 }
   0x7   :  { %476 = shalt.err (!%p473_p2)
}
   0x8   :  { %s477_s27 = scalar_lea.vmem %s18_s19, 2048  ;;  %p482_p4 = scmp.lt.s32.totalorder %s18_s19, %s18_s19 }
   0x9   :  { %p478_p3 = scmp.ne.s32.totalorder %s18_s19, %s477_s27  ;;  %p483_p5 = scmp.lt.s32.totalorder %s477_s27, %s477_s27 }
   0xb   :  { %p484_p6 = por %p483_p5, %p482_p4 }
   0xd   :  { %p485_p7 = pnand %p484_p6, %p478_p3 }
   0xf   :  { %488 = shalt.err (!%p485_p7)
}
  0x10   :  { %s516_s28 = smov 256   ;;  %s517_s29 = smov 16  }
  0x11   :  { %23 = dma.hbm_to_vmem [thread:$0]  %s672_s0, 2048, %s18_s19, [#allocation3], %s516_s28, %s516_s28, %s517_s29  }
  0x12   :  { %511 = dma.done.wait [#allocation3], 2048  }
  0x13   :  { %512 = vsyncadd [#allocation3], 4294965248  ;;  %v567_v0 = vld [vmem:[#allocation2 + $0x40] sm:$0xff]  ;;  %v569_v1 = vld [vmem:[#allocation2 + $0x48] sm:$0xff]  ;;  %v518_v24 = vmov 0.0   ;;  %vm153_vm0 = vcmask 261120   ;;  %v105_v33 = vlaneseq }
  0x14   :  { %v571_v2 = vld [vmem:[#allocation2] sm:$0xff]  ;;  %v63_v3 = vadd.f32 %v569_v1, %v567_v0  ;;  %v575_v4 = vld [vmem:[#allocation2 + $0x8] sm:$0xff]  ;;  %v577_v5 = vld [vmem:[#allocation2 + $0x50] sm:$0xff]  ;;  %432 = vmatprep.subr.mxu0 %v518_v24  ;;  %vm519_vm1 = vmmov 0   ;;  %vm236_vm2 = vcmask 15360   ;;  %v520_v28 = vmov 0.0|0.0  }
  0x15   :  { %v579_v6 = vld [vmem:[#allocation2 + $0x58] sm:$0xff]  ;;  %v51_v7 = vadd.f32 %v575_v4, %v571_v2  ;;  %v583_v8 = vld [vmem:[#allocation2 + $0x10] sm:$0xff]  ;;  %v591_v12 = vld [vmem:[#allocation2 + $0x60] sm:$0xff]  ;;  %434 = vmatprep.mubr.msk.f32.mxu0 %vm519_vm1, %v518_v24  ;;  %445 = vmatprep.mubr.msk.f32.mxu1 %vm519_vm1, %v518_v24  ;;  %v106_v35 = vand.u32 127, %v105_v33  ;;  %v108_v40 = vshrl.u32 %v105_v33, 7  ;;  %vm116_vm4 = vcmask 130112  }
  0x16   :  { %v585_v9 = vld [vmem:[#allocation2 + $0x18] sm:$0xff]  ;;  %64 = vadd.xlane.f32.xlu1 %v63_v3  ;;  %v66_v10 = vadd.f32 %v579_v6, %v577_v5  ;;  %v593_v13 = vld [vmem:[#allocation2 + $0x68] sm:$0xff]  ;;  %v595_v14 = vld [vmem:[#allocation2 + $0x20] sm:$0xff]  ;;  %448 = vmatprep.subr.bf16.mxu1 %v520_v28  ;;  %vm123_vm5 = vcmask 195712   ;;  %vm130_vm6 = vcmask 261312   ;;  %vm151_vm7 = vcmask 1041409  }
  0x17   :  { %52 = vadd.xlane.f32.xlu0 %v51_v7  ;;  %v54_v11 = vadd.f32 %v585_v9, %v583_v8  ;;  %v597_v15 = vld [vmem:[#allocation2 + $0x28] sm:$0xff]  ;;  %v69_v16 = vadd.f32 %v593_v13, %v591_v12  ;;  %v603_v18 = vld [vmem:[#allocation2 + $0x70] sm:$0xff]  ;;  %v605_v19 = vld [vmem:[#allocation2 + $0x78] sm:$0xff]  ;;  %v111_v37 = vadd.s32 4294967288, %v106_v35  ;;  %v118_v39 = vadd.s32 4294967280, %v106_v35 }
  0x18   :  { %v57_v17 = vadd.f32 %v597_v15, %v595_v14  ;;  %v607_v20 = vld [vmem:[#allocation2 + $0x30] sm:$0xff]  ;;  %v609_v21 = vld [vmem:[#allocation2 + $0x38] sm:$0xff]  ;;  %v72_v22 = vadd.f32 %v605_v19, %v603_v18  ;;  %v84_v25 = vld [vmem:[%s673_s1] sm:$0x3]  ;;  %v125_v44 = vadd.s32 4294967272, %v106_v35  ;;  %v109_v48 = vsub.s32 %v106_v35, %v108_v40 }
  0x19   :  { %v60_v23 = vadd.f32 %v609_v21, %v607_v20  ;;  %433 = vmatpush3.xpose.msk.msra.mxu0 %vm153_vm0, %v84_v25  ;;  %v86_v26 = vld [vmem:[%s675_s3] sm:$0xff]  ;;  %v87_v27 = vld [vmem:[%s675_s3 + $0x8] sm:$0xff]  ;;  %vm450_vm3 = vmpackc.low %vm236_vm2, %vm236_vm2  ;;  %v114_v42 = vsub.s32 %v111_v37, %v108_v40  ;;  %v121_v46 = vsub.s32 %v118_v39, %v108_v40 }
  0x1a   :  { %67 = vadd.xlane.f32.xlu1 %v66_v10  ;;  %v449_v29 = vpack.c.bf16 %v87_v27, %v86_v26  ;;  %v88_v30 = vld [vmem:[%s675_s3 + $0x10] sm:$0xff]  ;;  %v89_v31 = vld [vmem:[%s675_s3 + $0x18] sm:$0xff]  ;;  %v128_v55 = vsub.s32 %v125_v44, %v108_v40  ;;  %v415_v26 = vld [vmem:[%s674_s2] ss:$0 sm:$0xff]  ;;  %s521_s2 = smov [#allocation5]  }
  0x1b   :  { %55 = vadd.xlane.f32.xlu0 %v54_v11  ;;  %v453_v32 = vpack.c.bf16 %v89_v31, %v88_v30  ;;  %v418_v31 = vld [vmem:[%s676_s4] ss:$0 sm:$0xff]  ;;  %s403_s4 = sshll.u32 %s521_s2, 4  ;;  %s404_s4 = int_to_ptr.vmem [resolvable:$true] %s403_s4 }
  0x1c   :  { %451 = vmatpush3.bf16.xpose.msk.msra.mxu1 %vm450_vm3, %v449_v29  ;;  %s489_s18 = scalar_lea.vmem %s404_s4, 2048  ;;  %p494_p9 = scmp.lt.s32.totalorder %s404_s4, %s404_s4 }
  0x1d   :  { %452 = vmatprep.subr.bf16.mxu1 %v520_v28  ;;  %p490_p8 = scmp.ne.s32.totalorder %s404_s4, %s489_s18  ;;  %p495_p10 = scmp.lt.s32.totalorder %s489_s18, %s489_s18 }
  0x1e   :  { %70 = vadd.xlane.f32.xlu1 %v69_v16 }
  0x1f   :  { %58 = vadd.xlane.f32.xlu0 %v57_v17  ;;  %p496_p11 = por %p495_p10, %p494_p9 }
  0x21   :  { %p497_p12 = pnand %p496_p11, %p490_p8 }
  0x22   :  { %73 = vadd.xlane.f32.xlu1 %v72_v22 }
  0x23   :  { %61 = vadd.xlane.f32.xlu0 %v60_v23 }
  0x24   :  { %455 = vmatpush3.bf16.xpose.msk.msra.mxu1 %vm450_vm3, %v453_v32 }
  0xa3   :  { %v65_v34 = vpop.xlane.xlu1 %64 }
  0xa4   :  { %v53_v36 = vpop.xlane.xlu0 %52  ;;  %v80_v49 = vmul.f32 0.00390625, %v65_v34 }
  0xa5   :  { %v76_v52 = vmul.f32 0.00390625, %v53_v36 }
  0xa6   :  { %v135_v59 = vrot.slane %v80_v49, %v109_v48 }
  0xa7   :  { %v68_v38 = vpop.xlane.xlu1 %67  ;;  %v110_v63 = vrot.slane %v76_v52, %v109_v48 }
  0xa8   :  { %v56_v41 = vpop.xlane.xlu0 %55  ;;  %v81_v43 = vmul.f32 0.00390625, %v68_v38  ;;  %v330_v38 = vsub.s32 0, %v108_v40 }
  0xa9   :  { %v77_v45 = vmul.f32 0.00390625, %v56_v41 }
  0xaa   :  { %v139_v54 = vrot.slane %v81_v43, %v114_v42 }
  0xab   :  { %v71_v47 = vpop.xlane.xlu1 %70  ;;  %v115_v56 = vrot.slane %v77_v45, %v114_v42  ;;  %v349_v42 = vsub.s32 1, %v108_v40 }
  0xac   :  { %v82_v50 = vmul.f32 0.00390625, %v71_v47  ;;  %v59_v51 = vpop.xlane.xlu0 %58  ;;  %v140_v7 = vsel %vm116_vm4, %v139_v54, %v135_v59 }
  0xad   :  { %v78_v53 = vmul.f32 0.00390625, %v59_v51  ;;  %v117_v11 = vsel %vm116_vm4, %v115_v56, %v110_v63 }
  0xae   :  { %v144_v57 = vrot.slane %v82_v50, %v121_v46 }
  0xaf   :  { %v74_v58 = vpop.xlane.xlu1 %73  ;;  %v122_v60 = vrot.slane %v78_v53, %v121_v46 }
  0xb0   :  { %v83_v61 = vmul.f32 0.00390625, %v74_v58  ;;  %v62_v62 = vpop.xlane.xlu0 %61  ;;  %v145_v16 = vsel %vm123_vm5, %v144_v57, %v140_v7 }
  0xb1   :  { %v79_v3 = vmul.f32 0.00390625, %v62_v62  ;;  %v124_v22 = vsel %vm123_vm5, %v122_v60, %v117_v11 }
  0xb2   :  { %v149_v10 = vrot.slane %v83_v61, %v128_v55 }
  0xb3   :  { %v129_v17 = vrot.slane %v79_v3, %v128_v55 }
  0xb4   :  { %v150_v23 = vsel %vm130_vm6, %v149_v10, %v145_v16 }
  0xb5   :  { %v131_v24 = vsel %vm130_vm6, %v129_v17, %v124_v22 }
  0xb6   :  { %v152_v25 = vsel %vm151_vm7, %v150_v23, %v131_v24 }
  0xb7   :  { %435 = vmatmul.mubr.msk.f32.vlgmr.msra.gmra.mrb[0].mxu0 %vm153_vm0, %v152_v25 }
 0x18a   :  { %v225_v27 = vpop.f32.mrb[0].mxu0 }
 0x18b   :  { %v226_v28 = vadd.f32 %v415_v26, %v225_v27  ;;  %v436_v29 = vpop.f32.mrb[1].mxu0 }
 0x18d   :  { %v229_v30 = vmax.f32 %v226_v28, 0.0 }
 0x18f   :  { %446 = vmatmul.mubr.msk.f32.vlgmr.msra.gmra.mrb[0].mxu1 %vm236_vm2, %v229_v30 }
 0x262   :  { %v318_v32 = vpop.f32.mrb[0].mxu1 }
 0x263   :  { %v319_v33 = vadd.f32 %v418_v31, %v318_v32  ;;  %v447_v34 = vpop.f32.mrb[1].mxu1 }
 0x265   :  { %v424_v35 = vmul.f32 -1.442695, %v319_v33 }
 0x267   :  { %463 = vpow2.f32 %v424_v35 }
 0x271   :  { %v464_v36 = vpop.eup %463 }
 0x272   :  { %v325_v37 = vadd.f32 1.0, %v464_v36 }
 0x274   :  { %465 = vrcp.f32 %v325_v37 }
 0x27e   :  { %v466_v39 = vpop.eup %465 }
 0x27f   :  { %v331_v41 = vrot.slane %v466_v39, %v330_v38  ;;  %v350_v43 = vrot.slane %v466_v39, %v349_v42 }
 0x281   :  { %337 = vbcast.lane.b32.xlu1 %v331_v41, 264  ;;  %333 = vbcast.lane.b32.xlu0 %v331_v41, 256 }
 0x285   :  { %341 = vbcast.lane.b32.xlu1 %v331_v41, 272  ;;  %352 = vbcast.lane.b32.xlu0 %v350_v43, 256 }
 0x289   :  { %345 = vbcast.lane.b32.xlu1 %v331_v41, 280  ;;  %360 = vbcast.lane.b32.xlu0 %v350_v43, 272 }
 0x28d   :  { %356 = vbcast.lane.b32.xlu1 %v350_v43, 264 }
 0x291   :  { %364 = vbcast.lane.b32.xlu1 %v350_v43, 280 }
 0x2f3   :  { %v338_v44 = vpop.permute.xlu1 %337  ;;  %v334_v45 = vpop.permute.xlu0 %333 }
 0x2f4   :  { %v368_v46 = vmul.f32 %v338_v44, %v583_v8  ;;  %v369_v47 = vmul.f32 %v338_v44, %v585_v9  ;;  %v366_v48 = vmul.f32 %v334_v45, %v571_v2  ;;  %v367_v49 = vmul.f32 %v334_v45, %v575_v4 }
 0x2f6   :  { %384 = vst [vmem:[#allocation5 + $0x10] sm:$0xff] %v368_v46  ;;  %385 = vst [vmem:[#allocation5 + $0x18] sm:$0xff] %v369_v47 }
 0x2f7   :  { %382 = vst [vmem:[#allocation5] sm:$0xff] %v366_v48  ;;  %383 = vst [vmem:[#allocation5 + $0x8] sm:$0xff] %v367_v49  ;;  %v342_v40 = vpop.permute.xlu1 %341  ;;  %v353_v50 = vpop.permute.xlu0 %352 }
 0x2f8   :  { %v370_v51 = vmul.f32 %v342_v40, %v595_v14  ;;  %v371_v52 = vmul.f32 %v342_v40, %v597_v15  ;;  %v374_v53 = vmul.f32 %v353_v50, %v567_v0  ;;  %v375_v8 = vmul.f32 %v353_v50, %v569_v1 }
 0x2fa   :  { %386 = vst [vmem:[#allocation5 + $0x20] sm:$0xff] %v370_v51  ;;  %387 = vst [vmem:[#allocation5 + $0x28] sm:$0xff] %v371_v52 }
 0x2fb   :  { %390 = vst [vmem:[#allocation5 + $0x40] sm:$0xff] %v374_v53  ;;  %391 = vst [vmem:[#allocation5 + $0x48] sm:$0xff] %v375_v8  ;;  %v346_v2 = vpop.permute.xlu1 %345  ;;  %v361_v4 = vpop.permute.xlu0 %360 }
 0x2fc   :  { %v372_v9 = vmul.f32 %v346_v2, %v607_v20  ;;  %v373_v54 = vmul.f32 %v346_v2, %v609_v21  ;;  %v378_v55 = vmul.f32 %v361_v4, %v591_v12  ;;  %v379_v14 = vmul.f32 %v361_v4, %v593_v13 }
 0x2fe   :  { %388 = vst [vmem:[#allocation5 + $0x30] sm:$0xff] %v372_v9  ;;  %389 = vst [vmem:[#allocation5 + $0x38] sm:$0xff] %v373_v54 }
 0x2ff   :  { %394 = vst [vmem:[#allocation5 + $0x60] sm:$0xff] %v378_v55  ;;  %395 = vst [vmem:[#allocation5 + $0x68] sm:$0xff] %v379_v14  ;;  %v357_v0 = vpop.permute.xlu1 %356 }
 0x300   :  { %v376_v1 = vmul.f32 %v357_v0, %v577_v5  ;;  %v377_v15 = vmul.f32 %v357_v0, %v579_v6 }
 0x302   :  { %392 = vst [vmem:[#allocation5 + $0x50] sm:$0xff] %v376_v1  ;;  %393 = vst [vmem:[#allocation5 + $0x58] sm:$0xff] %v377_v15 }
 0x303   :  { %v365_v20 = vpop.permute.xlu1 %364 }
 0x304   :  { %v380_v21 = vmul.f32 %v365_v20, %v603_v18  ;;  %v381_v12 = vmul.f32 %v365_v20, %v605_v19 }
 0x306   :  { %396 = vst [vmem:[#allocation5 + $0x70] sm:$0xff] %v380_v21  ;;  %397 = vst [vmem:[#allocation5 + $0x78] sm:$0xff] %v381_v12 }
 0x307   :  { %500 = shalt.err (!%p497_p12)
}
 0x308   :  { %s501_s21 = scalar_lea.hbm %s677_s5, 2048 }
 0x309   :  { %p502_p13 = scmp.ne.s32.totalorder %s677_s5, %s501_s21  ;;  %p505_p0 = scmp.lt.u32.totalorder %s501_s21, %s677_s5 }
 0x30b   :  { %p507_p1 = pnand %p505_p0, %p502_p13 }
 0x30d   :  { %510 = shalt.err (!%p507_p1)
}
 0x30e   :  { %409 = dma.vmem_to_hbm [thread:$0]  %s404_s4, 2048, %s677_s5, [#allocation4], %s516_s28, %s516_s28, %s517_s29  }
 0x30f   :  { %513 = dma.done.wait [#allocation4], 2048  }
 0x310   :  { %514 = vsyncadd [#allocation4], 4294965248 }
 0x311   :  { %413 = vsyncpa [#allocation3], 1 }
 0x312   :  { %414 = vsyncpa [#allocation4], 1 }

</bundles_post_ra>
